<compile_context>
chip_gen: v5e
topology: v5e:2x2
jax: 0.10.0
libtpu: 0.0.40
codegen_flags: <defaults>
</compile_context>

<pallas_src>
import jax
import jax.numpy as jnp
import numpy as np
from jax.experimental import pallas as pl
from jax.experimental.pallas import tpu as pltpu


# ---------------------------------------------------------------------------
# Kernel
# ---------------------------------------------------------------------------
def _make_avgpool_kernel(band_w, full_band, compute_dtype):
    def kernel(cstarts_ref, x_ref, w_ref, o_ref):
        # cstarts_ref: (num_out_tiles,) int32 in SMEM (scalar prefetch)
        # x_ref: (block_rows, L_in)   -- resident across the inner j axis
        # w_ref: (band_w, To)         -- per-output-tile banded pooling matrix
        # o_ref: (block_rows, To)
        if full_band:
            x = x_ref[...]
        else:
            j = pl.program_id(1)
            c = pl.multiple_of(cstarts_ref[j], 128)   # lane-tile aligned start
            x = x_ref[:, pl.ds(c, band_w)]
        x = x.astype(compute_dtype)                   # no-op for bf16/f32 input
        o_ref[...] = jnp.dot(
            x, w_ref[...], preferred_element_type=jnp.float32
        ).astype(o_ref.dtype)

    return kernel


# ---------------------------------------------------------------------------
# Helpers
# ---------------------------------------------------------------------------
def _single(v):
    if isinstance(v, (tuple, list)):
        return int(v[0])
    return int(v)


def _round_up(x, m):
    return (x + m - 1) // m * m


def _pool_output_size(L_in, k, s, p, ceil_mode):
    if ceil_mode:
        L_out = -(-(L_in + 2 * p - k) // s) + 1
        # Skip the last window if it would start in the right padded region.
        if (L_out - 1) * s >= L_in + p:
            L_out -= 1
    else:
        L_out = (L_in + 2 * p - k) // s + 1
    return L_out


def _vmem_budget_bytes():
    """Generation-aware scoped-VMEM budget (bytes)."""
    cap = None
    try:
        info = pltpu.get_tpu_info()
        cap = getattr(info, "vmem_capacity_bytes", None) or getattr(
            info, "vmem_bytes", None)
    except Exception:
        cap = None
    if not cap or cap <= 0:
        cap = 64 * 1024 * 1024          # conservative fallback (v7x physical)
    # ~75% of physical, capped: ~96 MiB on v5e/v6e (128 MiB), ~48 MiB on v7x.
    return int(min(cap * 3 // 4, 100 * 1024 * 1024))


def _band_layout(L_in, k, s, p, To, num_out_tiles):
    """Pick band width + 128-aligned, in-bounds band starts for each out tile."""
    band_w_min = (To - 1) * s + k
    if band_w_min + 127 >= L_in:
        # Band would cover (almost) everything -> use the full input width.
        return L_in, True, np.zeros((num_out_tiles,), np.int32)
    # Largest multiple of 128 we can subtract from L_in while still covering
    # the worst-case window span after aligning starts down to 128.
    t = ((L_in - band_w_min - 127) // 128) * 128
    band_w = L_in - t                                 # >= band_w_min + 127
    lo = np.maximum(0, np.arange(num_out_tiles, dtype=np.int64) * To * s - p)
    c_starts = np.minimum((lo // 128) * 128, t).astype(np.int32)
    return band_w, False, c_starts


def _build_banded_pool_matrix(L_in, L_out, k, s, p, count_include_pad,
                              To, num_out_tiles, band_w, c_starts, dtype):
    """(num_out_tiles, band_w, To) pooling matrices with 1/divisor weights."""
    outs = np.arange(num_out_tiles * To)
    starts = outs * s - p
    if count_include_pad:
        div = np.minimum(starts + k, L_in + p) - starts        # ATen pool_size
    else:
        div = np.minimum(starts + k, L_in) - np.maximum(starts, 0)
    div = np.maximum(div, 1).astype(np.float64)
    inv = 1.0 / div
    inv[L_out:] = 0.0                       # zero weights for padded outputs
    W = np.zeros((num_out_tiles, band_w, To), dtype=np.float32)
    for j in range(num_out_tiles):
        cols = c_starts[j] + np.arange(band_w)                  # real cols < L_in
        sl = slice(j * To, (j + 1) * To)
        ws = starts[sl]
        in_win = (cols[:, None] >= ws[None, :]) & (cols[:, None] < ws[None, :] + k)
        W[j] = np.where(in_win, inv[sl][None, :], 0.0)
    return jnp.asarray(W, dtype=dtype)


# ---------------------------------------------------------------------------
# Wrapper (matches F.avg_pool1d semantics)
# ---------------------------------------------------------------------------
def avg_pool1d(x, kernel_size, stride=None, padding=0, ceil_mode=False,
               count_include_pad=True, block_rows=None, out_tile=None):
    """AvgPool1d forward. x: (N, C, L_in) or (C, L_in)."""
    k = _single(kernel_size)
    s = _single(stride) if stride is not None else k
    p = _single(padding)

    squeeze = (x.ndim == 2)
    if squeeze:
        x = x[None]
    N, C, L_in = x.shape

    L_out = _pool_output_size(L_in, k, s, p, ceil_mode)
    assert L_out >= 1, "invalid pooling configuration (empty output)"

    # Output tile width (lane axis): multiple of 128; 256 feeds the full MXU
    # N-dimension on v6e/v7x.
    if out_tile is None:
        To = min(256, _round_up(L_out, 128))
    else:
        To = max(128, _round_up(int(out_tile), 128))
    num_out_tiles = pl.cdiv(L_out, To)
    L_out_pad = num_out_tiles * To

    band_w, full_band, c_starts = _band_layout(L_in, k, s, p, To, num_out_tiles)

    # bf16 inputs run natively on the MXU (no f32 up-cast pass); everything
    # else computes in f32 (accumulation is always f32 via preferred_element_type).
    compute_dtype = jnp.bfloat16 if x.dtype == jnp.bfloat16 else jnp.float32
    w_dtype = compute_dtype

    W = _build_banded_pool_matrix(L_in, L_out, k, s, p, count_include_pad,
                                  To, num_out_tiles, band_w, c_starts, w_dtype)

    R = N * C
    x2 = x.reshape(R, L_in)                 # leading-dim merge: no HBM copy

    # Row-tile size from a generation-aware VMEM budget that includes the
    # double-buffered W and output blocks (not just x).
    budget = _vmem_budget_bytes()
    isz = x.dtype.itemsize
    wsz = jnp.dtype(w_dtype).itemsize
    if block_rows is None:
        w_bytes = 2 * band_w * To * wsz                  # double-buffered W
        per_row = 2 * L_in * isz + 2 * To * isz          # x + out, double-buffered
        avail = max(budget - w_bytes - (2 << 20), 8 * per_row)
        block_rows = int(avail // per_row)
    block_rows = max(8, min(int(block_rows), 4096))
    if block_rows >= R:
        block_rows = R                                   # single full-dim block
    elif block_rows >= 256:
        block_rows = (block_rows // 256) * 256           # 256x256 MXU M-dim
    else:
        block_rows = max(8, (block_rows // 8) * 8)

    # Ragged last row block is masked by Pallas -> no row padding copy.
    grid = (pl.cdiv(R, block_rows), num_out_tiles)

    kernel = _make_avgpool_kernel(band_w, full_band, compute_dtype)

    out2 = pl.pallas_call(
        kernel,
        out_shape=jax.ShapeDtypeStruct((R, L_out_pad), x.dtype),
        grid_spec=pltpu.PrefetchScalarGridSpec(
            num_scalar_prefetch=1,                       # band starts -> SMEM
            grid=grid,
            in_specs=[
                # x row block; invariant along the inner output-tile axis, so
                # it is DMA'd once per row tile.
                pl.BlockSpec((block_rows, L_in), lambda r, j, cs: (r, 0)),
                # per-output-tile banded pooling matrix (small, streamed).
                pl.BlockSpec((None, band_w, To), lambda r, j, cs: (j, 0, 0)),
            ],
            out_specs=pl.BlockSpec((block_rows, To), lambda r, j, cs: (r, j)),
        ),
        compiler_params=pltpu.CompilerParams(
            dimension_semantics=("parallel", "parallel"),  # megacore-shardable
            vmem_limit_bytes=budget,
        ),
    )(jnp.asarray(c_starts), x2, W)

    out = out2[:, :L_out].reshape(N, C, L_out)
    if squeeze:
        out = out[0]
    return out


# ---------------------------------------------------------------------------
# Pure-JAX reference (for verification only)
# ---------------------------------------------------------------------------
def _reference_avg_pool1d(x, kernel_size, stride, padding, ceil_mode,
                          count_include_pad):
    k, s, p = kernel_size, (stride if stride is not None else kernel_size), padding
    squeeze = (x.ndim == 2)
    if squeeze:
        x = x[None]
    N, C, L = x.shape
    L_out = _pool_output_size(L, k, s, p, ceil_mode)
    starts = np.arange(L_out) * s - p
    if count_include_pad:
        div = np.minimum(starts + k, L + p) - starts
    else:
        div = np.minimum(starts + k, L) - np.maximum(starts, 0)
    div = np.maximum(div, 1)
    pad_right = int(max(0, starts[-1] + k - L))
    xp = jnp.pad(x, ((0, 0), (0, 0), (p, pad_right)))
    gidx = (starts + p)[:, None] + np.arange(k)[None, :]        # (L_out, k)
    windows = xp[:, :, gidx]                                    # (N, C, L_out, k)
    out = windows.sum(-1) / jnp.asarray(div, x.dtype)
    if squeeze:
        out = out[0]
    return out


# ---------------------------------------------------------------------------
# Tests
# ---------------------------------------------------------------------------
if __name__ == "__main__":
    key = jax.random.PRNGKey(0)
    N, C, L = 2, 4, 16
    x = jax.random.normal(key, (N, C, L), dtype=jnp.float32)

    configs = [
        dict(kernel_size=2, stride=2, padding=0, ceil_mode=False, count_include_pad=True),
        dict(kernel_size=3, stride=2, padding=1, ceil_mode=False, count_include_pad=True),
        dict(kernel_size=3, stride=2, padding=1, ceil_mode=False, count_include_pad=False),
        dict(kernel_size=3, stride=2, padding=1, ceil_mode=True,  count_include_pad=True),
        dict(kernel_size=3, stride=2, padding=1, ceil_mode=True,  count_include_pad=False),
        dict(kernel_size=4, stride=3, padding=2, ceil_mode=True,  count_include_pad=False),
    ]

    # Tolerance covers default-precision MXU matmul behaviour across generations.
    TOL = 2e-2

    for cfg in configs:
        out = jax.block_until_ready(avg_pool1d(x, **cfg))
        ref = _reference_avg_pool1d(x, **cfg)
        assert out.shape == ref.shape, (cfg, out.shape, ref.shape)
        assert out.dtype == x.dtype
        assert jnp.allclose(out, ref, atol=TOL, rtol=TOL), (cfg,)

    # Multi-row-tile grid path with a ragged final row block (no row padding).
    x3 = jax.random.normal(jax.random.PRNGKey(1), (3, 5, 19), dtype=jnp.float32)
    cfg = dict(kernel_size=3, stride=2, padding=1, ceil_mode=True,
               count_include_pad=False)
    out = jax.block_until_ready(avg_pool1d(x3, block_rows=8, **cfg))
    ref = _reference_avg_pool1d(x3, **cfg)
    assert out.shape == ref.shape
    assert jnp.allclose(out, ref, atol=TOL, rtol=TOL)

    # Banded path (num_out_tiles > 1): exercises SMEM-prefetched band starts
    # and the lane-aligned dynamic slice of the resident x row block.
    xb = jax.random.normal(jax.random.PRNGKey(2), (4, 32, 1024), dtype=jnp.float32)
    for cip in (True, False):
        cfg = dict(kernel_size=4, stride=2, padding=1, ceil_mode=False,
                   count_include_pad=cip)
        out = jax.block_until_ready(avg_pool1d(xb, **cfg))
        ref = _reference_avg_pool1d(xb, **cfg)
        assert out.shape == ref.shape, (cfg, out.shape, ref.shape)
        assert jnp.allclose(out, ref, atol=TOL, rtol=TOL), ("banded", cfg)

    # bf16 MXU path on the banded config.
    xb16 = xb.astype(jnp.bfloat16)
    out = jax.block_until_ready(avg_pool1d(xb16, kernel_size=4, stride=2, padding=1))
    ref = _reference_avg_pool1d(xb16.astype(jnp.float32), 4, 2, 1, False, True)
    assert out.dtype == jnp.bfloat16
    assert out.shape == ref.shape
    assert jnp.allclose(out.astype(jnp.float32), ref, atol=3e-2, rtol=3e-2)

    # 2-D (C, L) input path.
    out2d = jax.block_until_ready(avg_pool1d(x[0], 3, 2, 1))
    ref2d = _reference_avg_pool1d(x[0], 3, 2, 1, False, True)
    assert out2d.shape == ref2d.shape
    assert jnp.allclose(out2d, ref2d, atol=TOL, rtol=TOL)

    # Docstring example: AvgPool1d(3, stride=2) on [[[1..7]]] -> [[[2, 4, 6]]]
    inp = jnp.array([[[1., 2, 3, 4, 5, 6, 7]]], dtype=jnp.float32)
    ex = jax.block_until_ready(avg_pool1d(inp, 3, stride=2))
    expect = jnp.array([[[2., 4., 6.]]], dtype=jnp.float32)
    assert ex.shape == expect.shape
    assert jnp.allclose(ex, expect, atol=TOL), ex

    print("KERNEL_OK")
</pallas_src>

<mosaic_0001>
module attributes {stable_mosaic.version = 11 : i64} {
  func.func @kernel(%arg0: i32, %arg1: i32, %arg2: memref<1xi32, #tpu.memory_space<smem>>, %arg3: memref<8x16xf32, #tpu.memory_space<vmem>>, %arg4: memref<1x16x128xf32, #tpu.memory_space<vmem>>, %arg5: memref<8x128xf32, #tpu.memory_space<vmem>>) attributes {dimension_semantics = [#tpu.dimension_semantics<parallel>, #tpu.dimension_semantics<parallel>], iteration_bounds = array<i64: 1, 1>, scalar_prefetch = 1 : i64, scratch_operands = 0 : i64, tpu.core_type = #tpu.core_type<tc>, window_params = [{transform_indices = @transform_0, window_bounds = array<i64: 8, 16>}, {transform_indices = @transform_1, window_bounds = array<i64: 1, 16, 128>}, {transform_indices = @transform_2, window_bounds = array<i64: 8, 128>}]} {
    %c0 = arith.constant 0 : index
    %c0_0 = arith.constant 0 : index
    %0 = vector.load %arg3[%c0, %c0_0] : memref<8x16xf32, #tpu.memory_space<vmem>>, vector<8x16xf32>
    %c0_1 = arith.constant 0 : index
    %c0_2 = arith.constant 0 : index
    %c0_3 = arith.constant 0 : index
    %1 = vector.load %arg4[%c0_1, %c0_2, %c0_3] : memref<1x16x128xf32, #tpu.memory_space<vmem>>, vector<1x16x128xf32>
    %2 = vector.shape_cast %1 : vector<1x16x128xf32> to vector<16x128xf32>
    %cst = arith.constant dense<0.000000e+00> : vector<8x128xf32>
    %3 = tpu.matmul %0, %2, %cst {dimension_numbers = #tpu.dot_dimension_numbers<[1], [0], [0], [1], [0, 0, 1, 1], [], []>} : vector<8x16xf32>, vector<16x128xf32>, vector<8x128xf32> -> vector<8x128xf32>
    %c0_4 = arith.constant 0 : index
    %c0_5 = arith.constant 0 : index
    %4 = vector.load %arg5[%c0_4, %c0_5] : memref<8x128xf32, #tpu.memory_space<vmem>>, vector<8x128xf32>
    tpu.vector_store %arg5[%c0_4, %c0_5], %3 {strides = array<i32>} : memref<8x128xf32, #tpu.memory_space<vmem>>, vector<8x128xf32>,
    return
  }
  func.func @transform_0(%arg0: i32, %arg1: i32, %arg2: memref<1xi32, #tpu.memory_space<smem>>) -> (i32, i32) {
    %c0_i32 = arith.constant 0 : i32
    %c0_i32_0 = arith.constant 0 : i32
    return %arg0, %c0_i32 : i32, i32
  }
  func.func @transform_1(%arg0: i32, %arg1: i32, %arg2: memref<1xi32, #tpu.memory_space<smem>>) -> (i32, i32, i32) {
    %c0_i32 = arith.constant 0 : i32
    %c0_i32_0 = arith.constant 0 : i32
    %c0_i32_1 = arith.constant 0 : i32
    return %arg1, %c0_i32, %c0_i32_0 : i32, i32, i32
  }
  func.func @transform_2(%arg0: i32, %arg1: i32, %arg2: memref<1xi32, #tpu.memory_space<smem>>) -> (i32, i32) {
    %c0_i32 = arith.constant 0 : i32
    return %arg0, %arg1 : i32, i32
  }
}

</mosaic_0001>

<bundles_post_ra>
// kernel: tpu_custom_call.1
= control target key start
LH: loop header
LB: loop body
LE: loop exit
PB: predicated region body
PF: predicated region fallthrough
CT: control target
= control target key end

     0   :  { %9 = vsyncpa [#allocation5], 0  ;;  %s208_s0 = inlined_call_operand.<no memory space> [shape: s32[1], index: 0, kind: input, shape index: {}]   ;;  %s209_s1 = inlined_call_operand.hbm [shape: f32[8,16], index: 1, kind: input, shape index: {}]   ;;  %s210_s2 = inlined_call_operand.hbm [shape: f32[1,16,128], index: 2, kind: input, shape index: {}]   ;;  %s211_s3 = inlined_call_operand.hbm [shape: f32[8,128], index: 3, kind: output, shape index: {}]  }
   0x1   :  { %10 = vsyncpa [#allocation8], 0 }
   0x2   :  { %11 = vsyncpa [#allocation6], 0  ;;  %s17_s14 = sshll.u32 %s209_s1, 4  ;;  %s174_s15 = smov [#allocation4]   ;;  %s18_s14 = int_to_ptr.hbm [resolvable:$true] %s17_s14 }
   0x3   :  { %s19_s16 = sshll.u32 %s174_s15, 4  ;;  %s27_s18 = sshll.u32 %s210_s2, 4  ;;  %s20_s16 = int_to_ptr.vmem [resolvable:$true] %s19_s16  ;;  %s28_s18 = int_to_ptr.hbm [resolvable:$true] %s27_s18 }
   0x4   :  { %22 = dma.hbm_to_vmem [thread:$0]  %s18_s14, 128, %s20_s16, [#allocation5]  }
   0x5   :  { %s175_s19 = smov [#allocation7]   ;;  %s176_s21 = smov 128  }
   0x6   :  { %s29_s20 = sshll.u32 %s175_s19, 4  ;;  %s177_s22 = smov 8   ;;  %s30_s20 = int_to_ptr.vmem [resolvable:$true] %s29_s20 }
   0x7   :  { %35 = dma.hbm_to_vmem [thread:$0]  %s28_s18, 256, %s30_s20, [#allocation8], %s176_s21, %s176_s21, %s177_s22  }
   0x8   :  { %168 = dma.done.wait [#allocation5], 128  }
   0x9   :  { %169 = vsyncadd [#allocation5], 4294967168 }
   0xa   :  { %170 = dma.done.wait [#allocation8], 256  }
   0xb   :  { %171 = vsyncadd [#allocation8], 4294967040  ;;  %v46_v0 = vld [vmem:[#allocation7 + $0x8] sm:$0xff]  ;;  %v45_v1 = vld [vmem:[#allocation7] sm:$0xff]  ;;  %vm47_vm0 = vcmask 130048   ;;  %s178_s1 = smov [#allocation9]  }
   0xc   :  { %65 = vmatpush.msra.mxu0 %v46_v0  ;;  %v44_v2 = vld [vmem:[#allocation4] sm:$0xff]  ;;  %s77_s2 = sshll.u32 %s178_s1, 4  ;;  %s79_s25 = sshll.u32 %s211_s3, 4  ;;  %s78_s2 = int_to_ptr.vmem [resolvable:$true] %s77_s2  ;;  %s80_s25 = int_to_ptr.hbm [resolvable:$true] %s79_s25 }
   0xe   :  { %66 = vmatpush.msra.mxu0 %v45_v1 }
   0xf   :  { %90 = vmatmul.msk.f32.vlgmr.msra.gmra.mxu0 %vm47_vm0, %v44_v2 }
  0x8c   :  { %v68_v3 = vpop.f32.mrf.mxu0 }
  0x8d   :  { %71 = vst [vmem:[#allocation9] sm:$0xff] %v68_v3 }
  0x8e   :  { %82 = dma.vmem_to_hbm [thread:$0]  %s78_s2, 128, %s80_s25, [#allocation6]  }
  0x8f   :  { %172 = dma.done.wait [#allocation6], 128  }
  0x90   :  { %173 = vsyncadd [#allocation6], 4294967168 }
  0x91   :  { %87 = vsyncpa [#allocation5], 1 }
  0x92   :  { %88 = vsyncpa [#allocation8], 1 }
  0x93   :  { %89 = vsyncpa [#allocation6], 1 }

</bundles_post_ra>
